<compile_context>
chip_gen: v5e
topology: v5e:2x2
jax: 0.10.0
libtpu: 0.0.40
codegen_flags: <defaults>
</compile_context>

<pallas_src>
import functools

import jax
import jax.numpy as jnp
from jax.experimental import pallas as pl
from jax.experimental.pallas import tpu as pltpu

LANE = 128


def _round_up(n, m):
    return ((n + m - 1) // m) * m


def mlp_kernel(x_ref,
               w1_ref, b1_ref,
               w2_ref, b2_ref,
               w3_ref, b3_ref,
               w4_ref, b4_ref,
               w5_ref, b5_ref,
               o_ref):
    """Whole 5-layer forward pass for one batch tile, entirely in VMEM."""

    def dense(h, w_ref, b_ref, relu):
        y = jnp.dot(h.astype(w_ref.dtype), w_ref[...],
                    preferred_element_type=jnp.float32) + b_ref[...]
        return jnp.maximum(y, 0.0) if relu else y

    h = x_ref[...]                       # already in compute dtype (no extra cast pass)
    h = dense(h, w1_ref, b1_ref, True)   # relu(fc1)
    h = dense(h, w2_ref, b2_ref, True)   # relu(fc2)
    h = dense(h, w3_ref, b3_ref, True)   # relu(fc3)
    h = dense(h, w4_ref, b4_ref, True)   # relu(fc4)
    o_ref[...] = dense(h, w5_ref, b5_ref, False)   # fc5 (no relu), f32 out


def pad_params(params):
    """Zero-pad (in, out) weights and (1, out) biases to lane multiples."""
    padded = []
    for w, b in params:
        fi, fo = w.shape
        fip, fop = _round_up(fi, LANE), _round_up(fo, LANE)
        wp = jnp.zeros((fip, fop), w.dtype).at[:fi, :fo].set(w)
        bp = jnp.zeros((1, fop), b.dtype).at[:, :fo].set(b)
        padded.append((wp, bp))
    return padded


def dnn_forward(x, params, *, tile_b=None, compute_dtype=jnp.float32):
    """x: (B, n_inputs). params: list of (W, b) with W shaped (in, out), b (1, out).

    Returns (B, n_outputs) float32, matching PyTorch's x.float() -> 5x Linear/ReLU.
    """
    B, n_in = x.shape
    n_out = params[-1][0].shape[1]

    padded = pad_params(params)
    n_in_p = padded[0][0].shape[0]
    n_out_p = padded[-1][0].shape[1]

    # Batch tile: whole (8-padded) batch for small B, capped at 256 for MXU fill
    # without spilling the 64-vreg file (sweet spot per v6e/v7x guidance).
    if tile_b is None:
        tile_b = min(_round_up(B, 8), 256)
    B_p = _round_up(B, tile_b)

    # Pad the batch/feature dims of x with zeros (padded rows/cols are discarded
    # or multiplied by zero weights, so they never leak into the result).
    x_p = (jnp.zeros((B_p, n_in_p), compute_dtype)
           .at[:B, :n_in].set(x.astype(compute_dtype)))

    flat_args = []
    in_specs = [pl.BlockSpec((tile_b, n_in_p), lambda i: (i, 0))]
    for (w, b) in padded:
        flat_args.append(w.astype(compute_dtype))   # bf16 fast path on v6e/v7x if requested
        flat_args.append(b)                         # bias stays f32 (added post-accumulation)
        in_specs.append(pl.BlockSpec(w.shape, lambda i: (0, 0)))   # full weight, resident
        in_specs.append(pl.BlockSpec(b.shape, lambda i: (0, 0)))   # full bias, resident

    out_spec = pl.BlockSpec((tile_b, n_out_p), lambda i: (i, 0))   # lane-dense stores

    itemsize = jnp.dtype(compute_dtype).itemsize
    flops = 2 * B_p * sum(w.shape[0] * w.shape[1] for w, _ in padded)
    bytes_accessed = (B_p * n_in_p * itemsize                     # x in
                      + B_p * n_out_p * 4                          # out
                      + sum(w.size * itemsize + b.size * 4 for w, b in padded))

    out = pl.pallas_call(
        mlp_kernel,
        out_shape=jax.ShapeDtypeStruct((B_p, n_out_p), jnp.float32),
        grid=(B_p // tile_b,),
        in_specs=in_specs,
        out_specs=out_spec,
        compiler_params=pltpu.CompilerParams(
            dimension_semantics=("parallel",)),    # free TC sharding when grid > 1
        cost_estimate=pl.CostEstimate(
            flops=flops, transcendentals=0, bytes_accessed=bytes_accessed),
    )(x_p, *flat_args)

    return out[:B, :n_out]


def init_params(key, n_inputs, n_outputs):
    """Deterministic synthetic init matching the PyTorch layer shapes (W as (in, out))."""
    dims = [n_inputs, 100, 50, 25, 10, n_outputs]
    params = []
    for li in range(len(dims) - 1):
        fan_in, fan_out = dims[li], dims[li + 1]
        key, kw, kb = jax.random.split(key, 3)
        bound = 1.0 / jnp.sqrt(jnp.float32(fan_in))   # same scale as torch Linear default
        w = jax.random.uniform(kw, (fan_in, fan_out), jnp.float32, -bound, bound)
        b = jax.random.uniform(kb, (1, fan_out), jnp.float32, -bound, bound)
        params.append((w, b))
    return params


def reference_forward(x, params):
    h = x.astype(jnp.float32)
    for i, (w, b) in enumerate(params):
        h = h @ w + b
        if i < len(params) - 1:
            h = jnp.maximum(h, 0.0)
    return h


if __name__ == "__main__":
    n_inputs, n_outputs = 32, 4
    batch = 16

    key = jax.random.PRNGKey(0)
    key, kx = jax.random.split(key)
    x = jax.random.normal(kx, (batch, n_inputs), jnp.float32)

    params = init_params(key, n_inputs, n_outputs)
    ref = reference_forward(x, params)

    # Default (faithful fp32) path: whole batch in one grid step, lane-padded.
    out = jax.block_until_ready(dnn_forward(x, params))
    assert out.shape == (batch, n_outputs)
    assert jnp.allclose(out, ref, atol=1e-4, rtol=1e-4), "fp32 mismatch vs pure-JAX reference"

    # bf16 MXU fast path (v6e/v7x): same kernel, bf16 operands, f32 accumulation.
    out_bf16 = jax.block_until_ready(
        dnn_forward(x, params, compute_dtype=jnp.bfloat16))
    assert out_bf16.shape == (batch, n_outputs)
    assert jnp.allclose(out_bf16, ref, atol=1e-1, rtol=1e-1), "bf16 path mismatch"

    print("KERNEL_OK")
</pallas_src>

<mosaic_0001>
module attributes {stable_mosaic.version = 11 : i64} {
  func.func @mlp_kernel(%arg0: i32, %arg1: memref<16x128xf32, #tpu.memory_space<vmem>>, %arg2: memref<128x128xf32, #tpu.memory_space<vmem>>, %arg3: memref<1x128xf32, #tpu.memory_space<vmem>>, %arg4: memref<128x128xf32, #tpu.memory_space<vmem>>, %arg5: memref<1x128xf32, #tpu.memory_space<vmem>>, %arg6: memref<128x128xf32, #tpu.memory_space<vmem>>, %arg7: memref<1x128xf32, #tpu.memory_space<vmem>>, %arg8: memref<128x128xf32, #tpu.memory_space<vmem>>, %arg9: memref<1x128xf32, #tpu.memory_space<vmem>>, %arg10: memref<128x128xf32, #tpu.memory_space<vmem>>, %arg11: memref<1x128xf32, #tpu.memory_space<vmem>>, %arg12: memref<16x128xf32, #tpu.memory_space<vmem>>) attributes {dimension_semantics = [#tpu.dimension_semantics<parallel>], iteration_bounds = array<i64: 1>, scalar_prefetch = 0 : i64, scratch_operands = 0 : i64, tpu.core_type = #tpu.core_type<tc>, window_params = [{transform_indices = @transform_0, window_bounds = array<i64: 16, 128>}, {pipeline_mode = #tpu.pipeline_mode<synchronous>, transform_indices = @transform_1, window_bounds = array<i64: 128, 128>}, {pipeline_mode = #tpu.pipeline_mode<synchronous>, transform_indices = @transform_2, window_bounds = array<i64: 1, 128>}, {pipeline_mode = #tpu.pipeline_mode<synchronous>, transform_indices = @transform_3, window_bounds = array<i64: 128, 128>}, {pipeline_mode = #tpu.pipeline_mode<synchronous>, transform_indices = @transform_4, window_bounds = array<i64: 1, 128>}, {pipeline_mode = #tpu.pipeline_mode<synchronous>, transform_indices = @transform_5, window_bounds = array<i64: 128, 128>}, {pipeline_mode = #tpu.pipeline_mode<synchronous>, transform_indices = @transform_6, window_bounds = array<i64: 1, 128>}, {pipeline_mode = #tpu.pipeline_mode<synchronous>, transform_indices = @transform_7, window_bounds = array<i64: 128, 128>}, {pipeline_mode = #tpu.pipeline_mode<synchronous>, transform_indices = @transform_8, window_bounds = array<i64: 1, 128>}, {pipeline_mode = #tpu.pipeline_mode<synchronous>, transform_indices = @transform_9, window_bounds = array<i64: 128, 128>}, {pipeline_mode = #tpu.pipeline_mode<synchronous>, transform_indices = @transform_10, window_bounds = array<i64: 1, 128>}, {transform_indices = @transform_11, window_bounds = array<i64: 16, 128>}]} {
    %c0 = arith.constant 0 : index
    %c0_0 = arith.constant 0 : index
    %0 = vector.load %arg1[%c0, %c0_0] : memref<16x128xf32, #tpu.memory_space<vmem>>, vector<16x128xf32>
    %c0_1 = arith.constant 0 : index
    %c0_2 = arith.constant 0 : index
    %1 = vector.load %arg2[%c0_1, %c0_2] : memref<128x128xf32, #tpu.memory_space<vmem>>, vector<128x128xf32>
    %cst = arith.constant dense<0.000000e+00> : vector<16x128xf32>
    %2 = tpu.matmul %0, %1, %cst {dimension_numbers = #tpu.dot_dimension_numbers<[1], [0], [0], [1], [0, 0, 1, 1], [], []>} : vector<16x128xf32>, vector<128x128xf32>, vector<16x128xf32> -> vector<16x128xf32>
    %c0_3 = arith.constant 0 : index
    %c0_4 = arith.constant 0 : index
    %3 = vector.load %arg3[%c0_3, %c0_4] : memref<1x128xf32, #tpu.memory_space<vmem>>, vector<1x128xf32>
    %4 = vector.broadcast %3 : vector<1x128xf32> to vector<16x128xf32>
    %5 = arith.addf %2, %4 : vector<16x128xf32>
    %cst_5 = arith.constant 0.000000e+00 : f32
    %6 = vector.broadcast %cst_5 : f32 to vector<16x128xf32>
    %7 = arith.maximumf %5, %6 : vector<16x128xf32>
    %c0_6 = arith.constant 0 : index
    %c0_7 = arith.constant 0 : index
    %8 = vector.load %arg4[%c0_6, %c0_7] : memref<128x128xf32, #tpu.memory_space<vmem>>, vector<128x128xf32>
    %cst_8 = arith.constant dense<0.000000e+00> : vector<16x128xf32>
    %9 = tpu.matmul %7, %8, %cst_8 {dimension_numbers = #tpu.dot_dimension_numbers<[1], [0], [0], [1], [0, 0, 1, 1], [], []>} : vector<16x128xf32>, vector<128x128xf32>, vector<16x128xf32> -> vector<16x128xf32>
    %c0_9 = arith.constant 0 : index
    %c0_10 = arith.constant 0 : index
    %10 = vector.load %arg5[%c0_9, %c0_10] : memref<1x128xf32, #tpu.memory_space<vmem>>, vector<1x128xf32>
    %11 = vector.broadcast %10 : vector<1x128xf32> to vector<16x128xf32>
    %12 = arith.addf %9, %11 : vector<16x128xf32>
    %cst_11 = arith.constant 0.000000e+00 : f32
    %13 = vector.broadcast %cst_11 : f32 to vector<16x128xf32>
    %14 = arith.maximumf %12, %13 : vector<16x128xf32>
    %c0_12 = arith.constant 0 : index
    %c0_13 = arith.constant 0 : index
    %15 = vector.load %arg6[%c0_12, %c0_13] : memref<128x128xf32, #tpu.memory_space<vmem>>, vector<128x128xf32>
    %cst_14 = arith.constant dense<0.000000e+00> : vector<16x128xf32>
    %16 = tpu.matmul %14, %15, %cst_14 {dimension_numbers = #tpu.dot_dimension_numbers<[1], [0], [0], [1], [0, 0, 1, 1], [], []>} : vector<16x128xf32>, vector<128x128xf32>, vector<16x128xf32> -> vector<16x128xf32>
    %c0_15 = arith.constant 0 : index
    %c0_16 = arith.constant 0 : index
    %17 = vector.load %arg7[%c0_15, %c0_16] : memref<1x128xf32, #tpu.memory_space<vmem>>, vector<1x128xf32>
    %18 = vector.broadcast %17 : vector<1x128xf32> to vector<16x128xf32>
    %19 = arith.addf %16, %18 : vector<16x128xf32>
    %cst_17 = arith.constant 0.000000e+00 : f32
    %20 = vector.broadcast %cst_17 : f32 to vector<16x128xf32>
    %21 = arith.maximumf %19, %20 : vector<16x128xf32>
    %c0_18 = arith.constant 0 : index
    %c0_19 = arith.constant 0 : index
    %22 = vector.load %arg8[%c0_18, %c0_19] : memref<128x128xf32, #tpu.memory_space<vmem>>, vector<128x128xf32>
    %cst_20 = arith.constant dense<0.000000e+00> : vector<16x128xf32>
    %23 = tpu.matmul %21, %22, %cst_20 {dimension_numbers = #tpu.dot_dimension_numbers<[1], [0], [0], [1], [0, 0, 1, 1], [], []>} : vector<16x128xf32>, vector<128x128xf32>, vector<16x128xf32> -> vector<16x128xf32>
    %c0_21 = arith.constant 0 : index
    %c0_22 = arith.constant 0 : index
    %24 = vector.load %arg9[%c0_21, %c0_22] : memref<1x128xf32, #tpu.memory_space<vmem>>, vector<1x128xf32>
    %25 = vector.broadcast %24 : vector<1x128xf32> to vector<16x128xf32>
    %26 = arith.addf %23, %25 : vector<16x128xf32>
    %cst_23 = arith.constant 0.000000e+00 : f32
    %27 = vector.broadcast %cst_23 : f32 to vector<16x128xf32>
    %28 = arith.maximumf %26, %27 : vector<16x128xf32>
    %c0_24 = arith.constant 0 : index
    %c0_25 = arith.constant 0 : index
    %29 = vector.load %arg10[%c0_24, %c0_25] : memref<128x128xf32, #tpu.memory_space<vmem>>, vector<128x128xf32>
    %cst_26 = arith.constant dense<0.000000e+00> : vector<16x128xf32>
    %30 = tpu.matmul %28, %29, %cst_26 {dimension_numbers = #tpu.dot_dimension_numbers<[1], [0], [0], [1], [0, 0, 1, 1], [], []>} : vector<16x128xf32>, vector<128x128xf32>, vector<16x128xf32> -> vector<16x128xf32>
    %c0_27 = arith.constant 0 : index
    %c0_28 = arith.constant 0 : index
    %31 = vector.load %arg11[%c0_27, %c0_28] : memref<1x128xf32, #tpu.memory_space<vmem>>, vector<1x128xf32>
    %32 = vector.broadcast %31 : vector<1x128xf32> to vector<16x128xf32>
    %33 = arith.addf %30, %32 : vector<16x128xf32>
    %c0_29 = arith.constant 0 : index
    %c0_30 = arith.constant 0 : index
    %34 = vector.load %arg12[%c0_29, %c0_30] : memref<16x128xf32, #tpu.memory_space<vmem>>, vector<16x128xf32>
    tpu.vector_store %arg12[%c0_29, %c0_30], %33 {strides = array<i32>} : memref<16x128xf32, #tpu.memory_space<vmem>>, vector<16x128xf32>,
    return
  }
  func.func @transform_0(%arg0: i32) -> (i32, i32) {
    %c0_i32 = arith.constant 0 : i32
    %c0_i32_0 = arith.constant 0 : i32
    return %arg0, %c0_i32 : i32, i32
  }
  func.func @transform_1(%arg0: i32) -> (i32, i32) {
    %c0_i32 = arith.constant 0 : i32
    %c0_i32_0 = arith.constant 0 : i32
    %c0_i32_1 = arith.constant 0 : i32
    return %c0_i32, %c0_i32_0 : i32, i32
  }
  func.func @transform_2(%arg0: i32) -> (i32, i32) {
    %c0_i32 = arith.constant 0 : i32
    %c0_i32_0 = arith.constant 0 : i32
    %c0_i32_1 = arith.constant 0 : i32
    return %c0_i32, %c0_i32_0 : i32, i32
  }
  func.func @transform_3(%arg0: i32) -> (i32, i32) {
    %c0_i32 = arith.constant 0 : i32
    %c0_i32_0 = arith.constant 0 : i32
    %c0_i32_1 = arith.constant 0 : i32
    return %c0_i32, %c0_i32_0 : i32, i32
  }
  func.func @transform_4(%arg0: i32) -> (i32, i32) {
    %c0_i32 = arith.constant 0 : i32
    %c0_i32_0 = arith.constant 0 : i32
    %c0_i32_1 = arith.constant 0 : i32
    return %c0_i32, %c0_i32_0 : i32, i32
  }
  func.func @transform_5(%arg0: i32) -> (i32, i32) {
    %c0_i32 = arith.constant 0 : i32
    %c0_i32_0 = arith.constant 0 : i32
    %c0_i32_1 = arith.constant 0 : i32
    return %c0_i32, %c0_i32_0 : i32, i32
  }
  func.func @transform_6(%arg0: i32) -> (i32, i32) {
    %c0_i32 = arith.constant 0 : i32
    %c0_i32_0 = arith.constant 0 : i32
    %c0_i32_1 = arith.constant 0 : i32
    return %c0_i32, %c0_i32_0 : i32, i32
  }
  func.func @transform_7(%arg0: i32) -> (i32, i32) {
    %c0_i32 = arith.constant 0 : i32
    %c0_i32_0 = arith.constant 0 : i32
    %c0_i32_1 = arith.constant 0 : i32
    return %c0_i32, %c0_i32_0 : i32, i32
  }
  func.func @transform_8(%arg0: i32) -> (i32, i32) {
    %c0_i32 = arith.constant 0 : i32
    %c0_i32_0 = arith.constant 0 : i32
    %c0_i32_1 = arith.constant 0 : i32
    return %c0_i32, %c0_i32_0 : i32, i32
  }
  func.func @transform_9(%arg0: i32) -> (i32, i32) {
    %c0_i32 = arith.constant 0 : i32
    %c0_i32_0 = arith.constant 0 : i32
    %c0_i32_1 = arith.constant 0 : i32
    return %c0_i32, %c0_i32_0 : i32, i32
  }
  func.func @transform_10(%arg0: i32) -> (i32, i32) {
    %c0_i32 = arith.constant 0 : i32
    %c0_i32_0 = arith.constant 0 : i32
    %c0_i32_1 = arith.constant 0 : i32
    return %c0_i32, %c0_i32_0 : i32, i32
  }
  func.func @transform_11(%arg0: i32) -> (i32, i32) {
    %c0_i32 = arith.constant 0 : i32
    %c0_i32_0 = arith.constant 0 : i32
    return %arg0, %c0_i32 : i32, i32
  }
}

</mosaic_0001>

<bundles_post_ra>
// kernel: tpu_custom_call.1
= control target key start
LH: loop header
LB: loop body
LE: loop exit
PB: predicated region body
PF: predicated region fallthrough
CT: control target
= control target key end

     0   :  { %16 = vsyncpa [#allocation3], 0  ;;  %s716_s0 = inlined_call_operand.hbm [shape: f32[16,128], index: 0, kind: input, shape index: {}]   ;;  %s717_s1 = inlined_call_operand.hbm [shape: f32[128,128], index: 1, kind: input, shape index: {}]   ;;  %s718_s2 = inlined_call_operand.vmem [shape: f32[1,128], index: 2, kind: input, shape index: {}]   ;;  %s719_s3 = inlined_call_operand.hbm [shape: f32[128,128], index: 3, kind: input, shape index: {}]   ;;  %s720_s4 = inlined_call_operand.vmem [shape: f32[1,128], index: 4, kind: input, shape index: {}]   ;;  %s721_s5 = inlined_call_operand.hbm [shape: f32[128,128], index: 5, kind: input, shape index: {}]   ;;  %s722_s6 = inlined_call_operand.vmem [shape: f32[1,128], index: 6, kind: input, shape index: {}]   ;;  %s723_s7 = inlined_call_operand.hbm [shape: f32[128,128], index: 7, kind: input, shape index: {}]   ;;  %s724_s8 = inlined_call_operand.vmem [shape: f32[1,128], index: 8, kind: input, shape index: {}]   ;;  %s725_s9 = inlined_call_operand.hbm [shape: f32[128,128], index: 9, kind: input, shape index: {}]   ;;  %s726_s10 = inlined_call_operand.vmem [shape: f32[1,128], index: 10, kind: input, shape index: {}]   ;;  %s727_s11 = inlined_call_operand.hbm [shape: f32[16,128], index: 11, kind: output, shape index: {}]  }
   0x1   :  { %17 = vsyncpa [#allocation6], 0 }
   0x2   :  { %18 = vsyncpa [#allocation9], 0 }
   0x3   :  { %19 = vsyncpa [#allocation12], 0 }
   0x4   :  { %20 = vsyncpa [#allocation4], 0  ;;  %s38_s19 = sshll.u32 %s717_s1, 4  ;;  %s590_s20 = smov [#allocation5]   ;;  %s39_s19 = int_to_ptr.hbm [resolvable:$true] %s38_s19 }
   0x5   :  { %s40_s21 = sshll.u32 %s590_s20, 4  ;;  %s68_s24 = sshll.u32 %s721_s5, 4  ;;  %s41_s21 = int_to_ptr.vmem [resolvable:$true] %s40_s21  ;;  %s69_s24 = int_to_ptr.hbm [resolvable:$true] %s68_s24 }
   0x6   :  { %s591_s25 = smov 128   ;;  %s592_s26 = smov 8  }
   0x7   :  { %46 = dma.hbm_to_vmem [thread:$0]  %s39_s19, 2048, %s41_s21, [#allocation6], %s591_s25, %s591_s25, %s592_s26  }
   0x8   :  { %s593_s27 = smov [#allocation8]   ;;  %s25_s1 = sshll.u32 %s716_s0, 4  ;;  %s26_s1 = int_to_ptr.hbm [resolvable:$true] %s25_s1 }
   0x9   :  { %s70_s28 = sshll.u32 %s593_s27, 4  ;;  %s53_s13 = sshll.u32 %s719_s3, 4  ;;  %s71_s28 = int_to_ptr.vmem [resolvable:$true] %s70_s28  ;;  %s54_s13 = int_to_ptr.hbm [resolvable:$true] %s53_s13 }
   0xa   :  { %76 = dma.hbm_to_vmem [thread:$0]  %s69_s24, 2048, %s71_s28, [#allocation9], %s591_s25, %s591_s25, %s592_s26  }
   0xb   :  { %s594_s14 = smov [#allocation2]   ;;  %s595_s16 = smov [#allocation7]  }
   0xc   :  { %s27_s15 = sshll.u32 %s594_s14, 4  ;;  %s55_s0 = sshll.u32 %s595_s16, 4  ;;  %s28_s15 = int_to_ptr.vmem [resolvable:$true] %s27_s15  ;;  %s56_s0 = int_to_ptr.vmem [resolvable:$true] %s55_s0 }
   0xd   :  { %33 = dma.hbm_to_vmem [thread:$0]  %s26_s1, 256, %s28_s15, [#allocation3], %s591_s25, %s591_s25, %s592_s26  }
   0xe   :  { %s83_s19 = sshll.u32 %s723_s7, 4  ;;  %s98_s21 = sshll.u32 %s725_s9, 4  ;;  %s84_s19 = int_to_ptr.hbm [resolvable:$true] %s83_s19  ;;  %s99_s21 = int_to_ptr.hbm [resolvable:$true] %s98_s21 }
   0xf   :  { %61 = dma.hbm_to_vmem [thread:$0]  %s54_s13, 2048, %s56_s0, [#allocation6], %s591_s25, %s591_s25, %s592_s26  }
  0x10   :  { %s596_s22 = smov [#allocation10]   ;;  %s597_s24 = smov [#allocation11]  }
  0x11   :  { %s85_s23 = sshll.u32 %s596_s22, 4  ;;  %s100_s7 = sshll.u32 %s597_s24, 4  ;;  %s86_s23 = int_to_ptr.vmem [resolvable:$true] %s85_s23  ;;  %s101_s7 = int_to_ptr.vmem [resolvable:$true] %s100_s7 }
  0x12   :  { %91 = dma.hbm_to_vmem [thread:$0]  %s84_s19, 2048, %s86_s23, [#allocation9], %s591_s25, %s591_s25, %s592_s26  }
  0x13   :  { %106 = dma.hbm_to_vmem [thread:$0]  %s99_s21, 2048, %s101_s7, [#allocation12], %s591_s25, %s591_s25, %s592_s26  }
  0x14   :  { %580 = dma.done.wait [#allocation3], 256  }
  0x15   :  { %581 = vsyncadd [#allocation3], 4294967040 }
  0x16   :  { %582 = dma.done.wait [#allocation6], 4096  }
  0x17   :  { %583 = vsyncadd [#allocation6], 4294963200 }
  0x18   :  { %584 = dma.done.wait [#allocation9], 4096  }
  0x19   :  { %585 = vsyncadd [#allocation9], 4294963200 }
  0x1a   :  { %586 = dma.done.wait [#allocation12], 2048  }
  0x1b   :  { %587 = vsyncadd [#allocation12], 4294965248  ;;  %v150_v0 = vld [vmem:[#allocation5 + $0x78] sm:$0xff]  ;;  %v149_v1 = vld [vmem:[#allocation5 + $0x70] sm:$0xff]  ;;  %s598_s12 = smov [#allocation13]  }
  0x1c   :  { %155 = vmatpush.msra.mxu0 %v150_v0  ;;  %v148_v2 = vld [vmem:[#allocation5 + $0x68] sm:$0xff]  ;;  %v147_v3 = vld [vmem:[#allocation5 + $0x60] sm:$0xff]  ;;  %v146_v4 = vld [vmem:[#allocation5 + $0x58] sm:$0xff]  ;;  %s364_s13 = sshll.u32 %s598_s12, 4  ;;  %s365_s13 = int_to_ptr.vmem [resolvable:$true] %s364_s13 }
  0x1d   :  { %v145_v5 = vld [vmem:[#allocation5 + $0x50] sm:$0xff]  ;;  %v195_v6 = vld [vmem:[#allocation7 + $0x78] sm:$0xff]  ;;  %v144_v8 = vld [vmem:[#allocation5 + $0x48] sm:$0xff] }
  0x1e   :  { %156 = vmatpush.msra.mxu0 %v149_v1  ;;  %v194_v7 = vld [vmem:[#allocation7 + $0x70] sm:$0xff]  ;;  %200 = vmatpush.msra.mxu1 %v195_v6  ;;  %v193_v9 = vld [vmem:[#allocation7 + $0x68] sm:$0xff]  ;;  %v143_v10 = vld [vmem:[#allocation5 + $0x40] sm:$0xff] }
  0x1f   :  { %v192_v11 = vld [vmem:[#allocation7 + $0x60] sm:$0xff]  ;;  %v142_v12 = vld [vmem:[#allocation5 + $0x38] sm:$0xff]  ;;  %v141_v14 = vld [vmem:[#allocation5 + $0x30] sm:$0xff] }
  0x20   :  { %157 = vmatpush.msra.mxu0 %v148_v2  ;;  %201 = vmatpush.msra.mxu1 %v194_v7  ;;  %v191_v13 = vld [vmem:[#allocation7 + $0x58] sm:$0xff]  ;;  %v190_v15 = vld [vmem:[#allocation7 + $0x50] sm:$0xff]  ;;  %v140_v16 = vld [vmem:[#allocation5 + $0x28] sm:$0xff] }
  0x21   :  { %v189_v17 = vld [vmem:[#allocation7 + $0x48] sm:$0xff]  ;;  %v139_v18 = vld [vmem:[#allocation5 + $0x20] sm:$0xff]  ;;  %v138_v20 = vld [vmem:[#allocation5 + $0x18] sm:$0xff] }
  0x22   :  { %158 = vmatpush.msra.mxu0 %v147_v3  ;;  %202 = vmatpush.msra.mxu1 %v193_v9  ;;  %v188_v19 = vld [vmem:[#allocation7 + $0x40] sm:$0xff]  ;;  %v187_v21 = vld [vmem:[#allocation7 + $0x38] sm:$0xff]  ;;  %v137_v22 = vld [vmem:[#allocation5 + $0x10] sm:$0xff] }
  0x23   :  { %v186_v23 = vld [vmem:[#allocation7 + $0x30] sm:$0xff]  ;;  %v136_v24 = vld [vmem:[#allocation5 + $0x8] sm:$0xff]  ;;  %v135_v26 = vld [vmem:[#allocation5] sm:$0xff] }
  0x24   :  { %159 = vmatpush.msra.mxu0 %v146_v4  ;;  %203 = vmatpush.msra.mxu1 %v192_v11  ;;  %v185_v25 = vld [vmem:[#allocation7 + $0x28] sm:$0xff]  ;;  %v184_v27 = vld [vmem:[#allocation7 + $0x20] sm:$0xff]  ;;  %v133_v28 = vld [vmem:[#allocation2] sm:$0xff] }
  0x25   :  { %v183_v29 = vld [vmem:[#allocation7 + $0x18] sm:$0xff]  ;;  %v182_v31 = vld [vmem:[#allocation7 + $0x10] sm:$0xff]  ;;  %v181_v32 = vld [vmem:[#allocation7 + $0x8] sm:$0xff] }
  0x26   :  { %160 = vmatpush.msra.mxu0 %v145_v5  ;;  %204 = vmatpush.msra.mxu1 %v191_v13  ;;  %v134_v30 = vld [vmem:[#allocation2 + $0x8] sm:$0xff]  ;;  %v180_v33 = vld [vmem:[#allocation7] sm:$0xff]  ;;  %v239_v35 = vld [vmem:[#allocation8 + $0x70] sm:$0xff] }
  0x27   :  { %v240_v34 = vld [vmem:[#allocation8 + $0x78] sm:$0xff]  ;;  %v238_v36 = vld [vmem:[#allocation8 + $0x68] sm:$0xff]  ;;  %v237_v37 = vld [vmem:[#allocation8 + $0x60] sm:$0xff] }
  0x28   :  { %161 = vmatpush.msra.mxu0 %v144_v8  ;;  %205 = vmatpush.msra.mxu1 %v190_v15  ;;  %v236_v38 = vld [vmem:[#allocation8 + $0x58] sm:$0xff]  ;;  %v235_v39 = vld [vmem:[#allocation8 + $0x50] sm:$0xff]  ;;  %v234_v40 = vld [vmem:[#allocation8 + $0x48] sm:$0xff] }
  0x29   :  { %245 = vmatpush.msra.mxu2 %v240_v34  ;;  %v233_v41 = vld [vmem:[#allocation8 + $0x40] sm:$0xff]  ;;  %v232_v42 = vld [vmem:[#allocation8 + $0x38] sm:$0xff]  ;;  %v407_v43 = vld [vmem:[%s718_s2] ss:$0 sm:$0xff] }
  0x2a   :  { %162 = vmatpush.msra.mxu0 %v143_v10  ;;  %206 = vmatpush.msra.mxu1 %v189_v17  ;;  %v231_v44 = vld [vmem:[#allocation8 + $0x30] sm:$0xff]  ;;  %v230_v45 = vld [vmem:[#allocation8 + $0x28] sm:$0xff]  ;;  %v229_v48 = vld [vmem:[#allocation8 + $0x20] sm:$0xff] }
  0x2b   :  { %246 = vmatpush.msra.mxu2 %v239_v35  ;;  %v228_v50 = vld [vmem:[#allocation8 + $0x18] sm:$0xff]  ;;  %v227_v54 = vld [vmem:[#allocation8 + $0x10] sm:$0xff]  ;;  %v226_v55 = vld [vmem:[#allocation8 + $0x8] sm:$0xff] }
  0x2c   :  { %163 = vmatpush.msra.mxu0 %v142_v12  ;;  %207 = vmatpush.msra.mxu1 %v188_v19  ;;  %v225_v56 = vld [vmem:[#allocation8] sm:$0xff]  ;;  %v285_v57 = vld [vmem:[#allocation10 + $0x78] sm:$0xff]  ;;  %v284_v58 = vld [vmem:[#allocation10 + $0x70] sm:$0xff] }
  0x2d   :  { %247 = vmatpush.msra.mxu2 %v238_v36  ;;  %290 = vmatpush.msra.mxu3 %v285_v57  ;;  %v283_v59 = vld [vmem:[#allocation10 + $0x68] sm:$0xff]  ;;  %v282_v60 = vld [vmem:[#allocation10 + $0x60] sm:$0xff]  ;;  %v281_v61 = vld [vmem:[#allocation10 + $0x58] sm:$0xff] }
  0x2e   :  { %164 = vmatpush.msra.mxu0 %v141_v14  ;;  %208 = vmatpush.msra.mxu1 %v187_v21  ;;  %v280_v62 = vld [vmem:[#allocation10 + $0x50] sm:$0xff]  ;;  %v279_v63 = vld [vmem:[#allocation10 + $0x48] sm:$0xff]  ;;  %v278_v0 = vld [vmem:[#allocation10 + $0x40] sm:$0xff] }
  0x2f   :  { %248 = vmatpush.msra.mxu2 %v237_v37  ;;  %291 = vmatpush.msra.mxu3 %v284_v58  ;;  %v277_v1 = vld [vmem:[#allocation10 + $0x38] sm:$0xff]  ;;  %v408_v2 = vld [vmem:[%s720_s4] ss:$0 sm:$0xff]  ;;  %v275_v4 = vld [vmem:[#allocation10 + $0x28] sm:$0xff] }
  0x30   :  { %165 = vmatpush.msra.mxu0 %v140_v16  ;;  %209 = vmatpush.msra.mxu1 %v186_v23  ;;  %v276_v3 = vld [vmem:[#allocation10 + $0x30] sm:$0xff]  ;;  %v274_v7 = vld [vmem:[#allocation10 + $0x20] sm:$0xff]  ;;  %v273_v9 = vld [vmem:[#allocation10 + $0x18] sm:$0xff] }
  0x31   :  { %249 = vmatpush.msra.mxu2 %v236_v38  ;;  %292 = vmatpush.msra.mxu3 %v283_v59  ;;  %v272_v13 = vld [vmem:[#allocation10 + $0x10] sm:$0xff]  ;;  %v271_v14 = vld [vmem:[#allocation10 + $0x8] sm:$0xff]  ;;  %v270_v15 = vld [vmem:[#allocation10] sm:$0xff] }
  0x32   :  { %166 = vmatpush.msra.mxu0 %v139_v18  ;;  %210 = vmatpush.msra.mxu1 %v185_v25  ;;  %v330_v16 = vld [vmem:[#allocation11 + $0x78] sm:$0xff]  ;;  %v329_v17 = vld [vmem:[#allocation11 + $0x70] sm:$0xff]  ;;  %v328_v18 = vld [vmem:[#allocation11 + $0x68] sm:$0xff] }
  0x33   :  { %250 = vmatpush.msra.mxu2 %v235_v39  ;;  %293 = vmatpush.msra.mxu3 %v282_v60  ;;  %v327_v19 = vld [vmem:[#allocation11 + $0x60] sm:$0xff]  ;;  %v325_v21 = vld [vmem:[#allocation11 + $0x50] sm:$0xff]  ;;  %v316_v37 = vld [vmem:[#allocation11 + $0x8] sm:$0xff] }
  0x34   :  { %167 = vmatpush.msra.mxu0 %v138_v20  ;;  %211 = vmatpush.msra.mxu1 %v184_v27  ;;  %v326_v20 = vld [vmem:[#allocation11 + $0x58] sm:$0xff]  ;;  %v323_v23 = vld [vmem:[#allocation11 + $0x40] sm:$0xff]  ;;  %v409_v25 = vld [vmem:[%s722_s6] ss:$0 sm:$0xff] }
  0x35   :  { %251 = vmatpush.msra.mxu2 %v234_v40  ;;  %294 = vmatpush.msra.mxu3 %v281_v61  ;;  %v320_v27 = vld [vmem:[#allocation11 + $0x28] sm:$0xff]  ;;  %v317_v36 = vld [vmem:[#allocation11 + $0x10] sm:$0xff]  ;;  %v315_v38 = vld [vmem:[#allocation11] sm:$0xff] }
  0x36   :  { %168 = vmatpush.msra.mxu0 %v137_v22  ;;  %212 = vmatpush.msra.mxu1 %v183_v29  ;;  %v324_v22 = vld [vmem:[#allocation11 + $0x48] sm:$0xff]  ;;  %v410_v39 = vld [vmem:[%s724_s8] ss:$0 sm:$0xff]  ;;  %s366_s8 = sshll.u32 %s727_s11, 4  ;;  %s367_s8 = int_to_ptr.hbm [resolvable:$true] %s366_s8 }
  0x37   :  { %252 = vmatpush.msra.mxu2 %v233_v41  ;;  %295 = vmatpush.msra.mxu3 %v280_v62 }
  0x38   :  { %169 = vmatpush.msra.mxu0 %v136_v24  ;;  %213 = vmatpush.msra.mxu1 %v182_v31  ;;  %v322_v24 = vld [vmem:[#allocation11 + $0x38] sm:$0xff] }
  0x39   :  { %253 = vmatpush.msra.mxu2 %v232_v42  ;;  %296 = vmatpush.msra.mxu3 %v279_v63 }
  0x3a   :  { %170 = vmatpush.msra.mxu0 %v135_v26  ;;  %214 = vmatpush.msra.mxu1 %v181_v32  ;;  %v321_v26 = vld [vmem:[#allocation11 + $0x30] sm:$0xff]  ;;  %v318_v32 = vld [vmem:[#allocation11 + $0x18] sm:$0xff] }
  0x3b   :  { %171 = vmatmul.f32.vlgmr.msra.gmra.mxu0 %v133_v28  ;;  %254 = vmatpush.msra.mxu2 %v231_v44 }
  0x3c   :  { %215 = vmatpush.msra.mxu1 %v180_v33  ;;  %297 = vmatpush.msra.mxu3 %v278_v0 }
  0x3d   :  { %255 = vmatpush.msra.mxu2 %v230_v45  ;;  %335 = vmatpush.msrb.mxu0 %v330_v16 }
  0x3e   :  { %298 = vmatpush.msra.mxu3 %v277_v1  ;;  %382 = vmatpush.msrb.mxu1 %v330_v16 }
  0x3f   :  { %256 = vmatpush.msra.mxu2 %v229_v48  ;;  %336 = vmatpush.msrb.mxu0 %v329_v17 }
  0x40   :  { %299 = vmatpush.msra.mxu3 %v276_v3  ;;  %383 = vmatpush.msrb.mxu1 %v329_v17 }
  0x41   :  { %257 = vmatpush.msra.mxu2 %v228_v50  ;;  %337 = vmatpush.msrb.mxu0 %v328_v18 }
  0x42   :  { %300 = vmatpush.msra.mxu3 %v275_v4  ;;  %384 = vmatpush.msrb.mxu1 %v328_v18 }
  0x43   :  { %174 = vmatmul.f32.gmra.mxu0 %v134_v30  ;;  %258 = vmatpush.msra.mxu2 %v227_v54  ;;  %v319_v30 = vld [vmem:[#allocation11 + $0x20] sm:$0xff] }
  0x44   :  { %301 = vmatpush.msra.mxu3 %v274_v7  ;;  %338 = vmatpush.msrb.mxu0 %v327_v19 }
  0x45   :  { %259 = vmatpush.msra.mxu2 %v226_v55  ;;  %385 = vmatpush.msrb.mxu1 %v327_v19 }
  0x46   :  { %302 = vmatpush.msra.mxu3 %v273_v9  ;;  %339 = vmatpush.msrb.mxu0 %v326_v20 }
  0x47   :  { %260 = vmatpush.msra.mxu2 %v225_v56  ;;  %386 = vmatpush.msrb.mxu1 %v326_v20 }
  0x48   :  { %303 = vmatpush.msra.mxu3 %v272_v13  ;;  %340 = vmatpush.msrb.mxu0 %v325_v21 }
  0x49   :  { %387 = vmatpush.msrb.mxu1 %v325_v21 }
  0x4a   :  { %304 = vmatpush.msra.mxu3 %v271_v14  ;;  %341 = vmatpush.msrb.mxu0 %v324_v22 }
  0x4b   :  { %388 = vmatpush.msrb.mxu1 %v324_v22 }
  0x4c   :  { %305 = vmatpush.msra.mxu3 %v270_v15  ;;  %342 = vmatpush.msrb.mxu0 %v323_v23 }
  0x4d   :  { %389 = vmatpush.msrb.mxu1 %v323_v23 }
  0x4e   :  { %343 = vmatpush.msrb.mxu0 %v322_v24 }
  0x4f   :  { %390 = vmatpush.msrb.mxu1 %v322_v24 }
  0x50   :  { %344 = vmatpush.msrb.mxu0 %v321_v26 }
  0x51   :  { %391 = vmatpush.msrb.mxu1 %v321_v26 }
  0x52   :  { %345 = vmatpush.msrb.mxu0 %v320_v27 }
  0x53   :  { %392 = vmatpush.msrb.mxu1 %v320_v27 }
  0x54   :  { %346 = vmatpush.msrb.mxu0 %v319_v30 }
  0x55   :  { %393 = vmatpush.msrb.mxu1 %v319_v30 }
  0x56   :  { %347 = vmatpush.msrb.mxu0 %v318_v32 }
  0x57   :  { %394 = vmatpush.msrb.mxu1 %v318_v32 }
  0x58   :  { %348 = vmatpush.msrb.mxu0 %v317_v36 }
  0x59   :  { %395 = vmatpush.msrb.mxu1 %v317_v36 }
  0x5a   :  { %349 = vmatpush.msrb.mxu0 %v316_v37 }
  0x5b   :  { %396 = vmatpush.msrb.mxu1 %v316_v37 }
  0x5c   :  { %350 = vmatpush.msrb.mxu0 %v315_v38 }
  0x5d   :  { %397 = vmatpush.msrb.mxu1 %v315_v38 }
  0xb8   :  { %v172_v46 = vpop.f32.mrf.mxu0 }
  0xb9   :  { %v173_v47 = vadd.f32 %v407_v43, %v172_v46  ;;  %v411_v46 = vld [vmem:[%s726_s10] ss:$0 sm:$0xff] }
  0xbb   :  { %v178_v49 = vmax.f32 %v173_v47, 0.0 }
  0xbd   :  { %216 = vmatmul.f32.vlgmr.msra.gmra.mxu1 %v178_v49 }
  0xc0   :  { %v175_v51 = vpop.f32.mrf.mxu0 }
  0xc1   :  { %v176_v52 = vadd.f32 %v407_v43, %v175_v51 }
  0xc3   :  { %v179_v53 = vmax.f32 %v176_v52, 0.0 }
  0xc5   :  { %219 = vmatmul.f32.gmra.mxu1 %v179_v53 }
 0x13a   :  { %v217_v5 = vpop.f32.mrf.mxu1 }
 0x13b   :  { %v218_v6 = vadd.f32 %v408_v2, %v217_v5 }
 0x13d   :  { %v223_v8 = vmax.f32 %v218_v6, 0.0 }
 0x13f   :  { %261 = vmatmul.f32.vlgmr.msra.gmra.mxu2 %v223_v8 }
 0x142   :  { %v220_v10 = vpop.f32.mrf.mxu1 }
 0x143   :  { %v221_v11 = vadd.f32 %v408_v2, %v220_v10 }
 0x145   :  { %v224_v12 = vmax.f32 %v221_v11, 0.0 }
 0x147   :  { %264 = vmatmul.f32.gmra.mxu2 %v224_v12 }
 0x1c2   :  { %v262_v28 = vpop.f32.mrf.mxu2 }
 0x1c3   :  { %v263_v29 = vadd.f32 %v409_v25, %v262_v28 }
 0x1c5   :  { %v268_v31 = vmax.f32 %v263_v29, 0.0 }
 0x1c7   :  { %306 = vmatmul.f32.vlgmr.msra.gmra.mxu3 %v268_v31 }
 0x1ca   :  { %v265_v33 = vpop.f32.mrf.mxu2 }
 0x1cb   :  { %v266_v34 = vadd.f32 %v409_v25, %v265_v33 }
 0x1cd   :  { %v269_v35 = vmax.f32 %v266_v34, 0.0 }
 0x1cf   :  { %309 = vmatmul.f32.gmra.mxu3 %v269_v35 }
 0x24a   :  { %v307_v40 = vpop.f32.mrf.mxu3 }
 0x24b   :  { %v308_v41 = vadd.f32 %v410_v39, %v307_v40 }
 0x24d   :  { %v313_v42 = vmax.f32 %v308_v41, 0.0 }
 0x24f   :  { %351 = vmatmul.f32.vlgmr.msrb.gmra.mxu0 %v313_v42 }
 0x252   :  { %v310_v43 = vpop.f32.mrf.mxu3 }
 0x253   :  { %v311_v44 = vadd.f32 %v410_v39, %v310_v43 }
 0x255   :  { %v314_v45 = vmax.f32 %v311_v44, 0.0 }
 0x257   :  { %354 = vmatmul.f32.vlgmr.msrb.gmra.mxu1 %v314_v45 }
 0x2cc   :  { %v352_v47 = vpop.f32.mrf.mxu0 }
 0x2cd   :  { %v353_v48 = vadd.f32 %v411_v46, %v352_v47 }
 0x2cf   :  { %358 = vst [vmem:[#allocation13] sm:$0xff] %v353_v48 }
 0x2d4   :  { %v355_v49 = vpop.f32.mrf.mxu1 }
 0x2d5   :  { %v356_v50 = vadd.f32 %v411_v46, %v355_v49 }
 0x2d7   :  { %359 = vst [vmem:[#allocation13 + $0x8] sm:$0xff] %v356_v50 }
 0x2d8   :  { %372 = dma.vmem_to_hbm [thread:$0]  %s365_s13, 256, %s367_s8, [#allocation4], %s591_s25, %s591_s25, %s592_s26  }
 0x2d9   :  { %588 = dma.done.wait [#allocation4], 256  }
 0x2da   :  { %589 = vsyncadd [#allocation4], 4294967040 }
 0x2db   :  { %377 = vsyncpa [#allocation3], 1 }
 0x2dc   :  { %378 = vsyncpa [#allocation6], 1 }
 0x2dd   :  { %379 = vsyncpa [#allocation9], 1 }
 0x2de   :  { %380 = vsyncpa [#allocation12], 1 }
 0x2df   :  { %381 = vsyncpa [#allocation4], 1 }

</bundles_post_ra>
